<compile_context>
chip_gen: v6e
topology: v6e:2x2x1
jax: 0.10.0
libtpu: 0.0.40
codegen_flags: <defaults>
</compile_context>

<pallas_src>
import functools
import math

import jax
import jax.numpy as jnp
from jax.experimental import pallas as pl
from jax.experimental.pallas import tpu as pltpu


# ----------------------------------------------------------------------------
# Buffer construction (identical math to the PyTorch __init__)
# ----------------------------------------------------------------------------
def _make_pos_embedding(emb_size: int, maxlen: int = 5000) -> jnp.ndarray:
    den = jnp.exp(-jnp.arange(0, emb_size, 2, dtype=jnp.float32)
                  * math.log(10000.0) / emb_size)                      # (E/2,)
    pos = jnp.arange(0, maxlen, dtype=jnp.float32).reshape(maxlen, 1)  # (maxlen,1)
    angles = pos * den                                                 # (maxlen, E/2)
    pe = jnp.zeros((maxlen, emb_size), dtype=jnp.float32)
    pe = pe.at[:, 0::2].set(jnp.sin(angles))
    pe = pe.at[:, 1::2].set(jnp.cos(angles))
    return pe[:, None, :]                                              # (maxlen, 1, E)


# ----------------------------------------------------------------------------
# Kernels
# ----------------------------------------------------------------------------
def _packed_eval_kernel(tok_ref, pe_ref, out_ref, *, n_groups, emb):
    # tok_ref/out_ref: (tS, n_groups*E), pe_ref: (tS, E); E % 128 == 0 so every
    # static slice below is lane-aligned -> unmasked full-lane loads/stores.
    pe = pe_ref[...]
    for g in range(n_groups):
        sl = slice(g * emb, (g + 1) * emb)
        out_ref[:, sl] = (tok_ref[:, sl] + pe).astype(out_ref.dtype)


def _packed_train_kernel(tok_ref, pe_ref, keep_ref, out_ref, *, n_groups, emb, scale):
    pe = pe_ref[...]
    for g in range(n_groups):
        sl = slice(g * emb, (g + 1) * emb)
        y = (tok_ref[:, sl] + pe) * (keep_ref[:, sl] * scale)
        out_ref[:, sl] = y.astype(out_ref.dtype)


def _fallback_eval_kernel(tok_ref, pe_ref, out_ref):
    # tok_ref: (tS, B, E), pe_ref: (tS, 1, E) -> sublane broadcast over B.
    out_ref[...] = (tok_ref[...] + pe_ref[...]).astype(out_ref.dtype)


def _fallback_train_kernel(tok_ref, pe_ref, keep_ref, out_ref, *, scale):
    y = (tok_ref[...] + pe_ref[...]) * (keep_ref[...] * scale)
    out_ref[...] = y.astype(out_ref.dtype)


# ----------------------------------------------------------------------------
# Tiling helpers
# ----------------------------------------------------------------------------
def _vmem_capacity_bytes() -> int:
    try:
        return int(pltpu.get_tpu_info().vmem_capacity_bytes)
    except Exception:
        return 64 << 20            # conservative default (v7x per-TC VMEM)


def _choose_packed_tiles(S, B, E, itemsize, max_block_bytes):
    """Pick (tS, bG): token block is (tS, bG*E), bG divides B."""
    sub = 16 if itemsize < 4 else 8              # sublane rows per tile along S
    # Largest divisor of B whose minimum-height block still fits the budget.
    bG = 1
    for d in range(B, 0, -1):
        if B % d == 0 and d * E * itemsize * sub <= max_block_bytes:
            bG = d
            break
    row_bytes = bG * E * itemsize
    tS = max(sub, (max_block_bytes // row_bytes) // sub * sub)
    tS = min(tS, S)
    # Keep >= 2 grid steps so both v7x TensorCores get work.
    if pl.cdiv(S, tS) * pl.cdiv(B, bG) < 2 and S >= 2 * sub:
        tS = max(sub, (pl.cdiv(S, 2) // sub) * sub)
    return tS, bG


def _choose_fallback_tile(S, B, E, itemsize, max_block_bytes):
    row_bytes = B * E * itemsize
    tS = max(1, max_block_bytes // row_bytes)
    tS = min(tS, S)
    if pl.cdiv(S, tS) < 2 and S >= 2:
        tS = pl.cdiv(S, 2)
    return tS


# ----------------------------------------------------------------------------
# Wrapper
# ----------------------------------------------------------------------------
def positional_encoding_forward(token_embedding: jnp.ndarray,
                                pos_embedding: jnp.ndarray,
                                *,
                                dropout_rate: float = 0.0,
                                train: bool = False,
                                rng_key=None,
                                max_block_bytes: int | None = None,
                                min_pallas_bytes: int = 1 << 20,
                                force_pallas: bool = False) -> jnp.ndarray:
    S, B, E = token_embedding.shape
    dtype = token_embedding.dtype
    itemsize = dtype.itemsize
    pe3 = pos_embedding[:S].astype(dtype)                              # (S, 1, E)

    use_dropout = bool(train) and float(dropout_rate) > 0.0
    scale = 1.0 / (1.0 - float(dropout_rate)) if use_dropout else 1.0
    keep3 = None
    if use_dropout:
        if rng_key is None:
            rng_key = jax.random.PRNGKey(0)
        keep3 = jax.random.bernoulli(
            rng_key, 1.0 - float(dropout_rate), (S, B, E)).astype(dtype)

    total_bytes = S * B * E * itemsize
    if total_bytes < min_pallas_bytes and not force_pallas:
        # Tiny tensors: XLA's fused add beats pallas_call fixed overhead.
        y = token_embedding + pe3
        if use_dropout:
            y = y * keep3 * scale
        return y.astype(dtype)

    if max_block_bytes is None:
        cap = _vmem_capacity_bytes()
        # ~4 MiB blocks on 64 MiB VMEM (v7x), up to 8 MiB on 128 MiB parts.
        max_block_bytes = int(min(max(cap // 16, 4 << 20), 8 << 20))

    packed = (E % 128 == 0)
    n_stream = 3 if use_dropout else 2            # HBM-streamed tensors (tok[,keep],out)

    if packed:
        tS, bG = _choose_packed_tiles(S, B, E, itemsize, max_block_bytes)
        grid = (pl.cdiv(S, tS), pl.cdiv(B, bG))
        tok2 = token_embedding.reshape(S, B * E)                       # free view
        pe2 = pe3.reshape(S, E)

        blk_bytes = tS * bG * E * itemsize
        pe_blk_bytes = tS * E * itemsize
        footprint = 2 * (n_stream * blk_bytes + pe_blk_bytes)          # double-buffered
        vmem_limit = int(max(16 << 20, min(footprint + (4 << 20), 48 << 20)))

        cost = pl.CostEstimate(
            flops=(3 if use_dropout else 1) * S * B * E,
            transcendentals=0,
            bytes_accessed=(n_stream * S * B * E + S * E) * itemsize)
        cparams = pltpu.CompilerParams(
            dimension_semantics=("parallel", "parallel"),
            vmem_limit_bytes=vmem_limit)

        tok_spec = pl.BlockSpec((tS, bG * E), lambda i, j: (i, j))
        pe_spec = pl.BlockSpec((tS, E), lambda i, j: (i, 0))
        out_spec = pl.BlockSpec((tS, bG * E), lambda i, j: (i, j))

        if use_dropout:
            kernel = functools.partial(_packed_train_kernel,
                                       n_groups=bG, emb=E, scale=scale)
            in_specs = [tok_spec, pe_spec,
                        pl.BlockSpec((tS, bG * E), lambda i, j: (i, j))]
            args = (tok2, pe2, keep3.reshape(S, B * E))
        else:
            kernel = functools.partial(_packed_eval_kernel, n_groups=bG, emb=E)
            in_specs = [tok_spec, pe_spec]
            args = (tok2, pe2)

        out2 = pl.pallas_call(
            kernel,
            out_shape=jax.ShapeDtypeStruct((S, B * E), dtype),
            grid_spec=pltpu.PrefetchScalarGridSpec(
                num_scalar_prefetch=0, grid=grid,
                in_specs=in_specs, out_specs=out_spec),
            compiler_params=cparams,
            cost_estimate=cost,
        )(*args)
        return out2.reshape(S, B, E)

    # ------------------------------------------------------------------
    # Fallback layout: E % 128 != 0 (small/odd embedding sizes).
    # TODO(synk): last dim < 128 produces masked partial stores; pad E to a
    #             multiple of 128 upstream for production shapes.
    # ------------------------------------------------------------------
    tS = _choose_fallback_tile(S, B, E, itemsize, max_block_bytes)
    grid = (pl.cdiv(S, tS),)

    blk_bytes = tS * B * E * itemsize
    pe_blk_bytes = tS * E * itemsize
    footprint = 2 * (n_stream * blk_bytes + pe_blk_bytes)
    vmem_limit = int(max(16 << 20, min(footprint + (4 << 20), 48 << 20)))

    cost = pl.CostEstimate(
        flops=(3 if use_dropout else 1) * S * B * E,
        transcendentals=0,
        bytes_accessed=(n_stream * S * B * E + S * E) * itemsize)
    cparams = pltpu.CompilerParams(
        dimension_semantics=("parallel",),
        vmem_limit_bytes=vmem_limit)

    tok_spec = pl.BlockSpec((tS, B, E), lambda i: (i, 0, 0))
    pe_spec = pl.BlockSpec((tS, 1, E), lambda i: (i, 0, 0))
    out_spec = pl.BlockSpec((tS, B, E), lambda i: (i, 0, 0))

    if use_dropout:
        kernel = functools.partial(_fallback_train_kernel, scale=scale)
        in_specs = [tok_spec, pe_spec, pl.BlockSpec((tS, B, E), lambda i: (i, 0, 0))]
        args = (token_embedding, pe3, keep3)
    else:
        kernel = _fallback_eval_kernel
        in_specs = [tok_spec, pe_spec]
        args = (token_embedding, pe3)

    out = pl.pallas_call(
        kernel,
        out_shape=jax.ShapeDtypeStruct((S, B, E), dtype),
        grid_spec=pltpu.PrefetchScalarGridSpec(
            num_scalar_prefetch=0, grid=grid,
            in_specs=in_specs, out_specs=out_spec),
        compiler_params=cparams,
        cost_estimate=cost,
    )(*args)
    return out


# ----------------------------------------------------------------------------
# Demo / checks
# ----------------------------------------------------------------------------
if __name__ == "__main__":
    key = jax.random.PRNGKey(0)
    k1, k2, k3, kd = jax.random.split(key, 4)

    # --- Test 1: small module-consistent shapes (eval, fallback layout) -----
    emb_size, maxlen = 32, 64
    seq_len, batch = 8, 2
    pe_small = _make_pos_embedding(emb_size, maxlen)
    tok_small = jax.random.normal(k1, (seq_len, batch, emb_size), jnp.float32)

    out1 = positional_encoding_forward(tok_small, pe_small, force_pallas=True)
    out1 = jax.block_until_ready(out1)
    ref1 = tok_small + pe_small[:seq_len]
    assert out1.shape == (seq_len, batch, emb_size)
    assert jnp.allclose(out1, ref1, atol=1e-6), "small eval mismatch"

    # --- Test 2: lane-dense packed layout, multi-step sequence grid ---------
    S2, B2, E2 = 256, 8, 128
    pe_big = _make_pos_embedding(E2, 512)
    tok_big = jax.random.normal(k2, (S2, B2, E2), jnp.float32)

    out2 = positional_encoding_forward(tok_big, pe_big, force_pallas=True,
                                       max_block_bytes=128 * 1024)   # grid of 8
    out2 = jax.block_until_ready(out2)
    ref2 = tok_big + pe_big[:S2]
    assert jnp.allclose(out2, ref2, atol=1e-6), "tiled eval mismatch"

    # --- Test 3: wide rows -> batch-group splitting (2-D grid) --------------
    S3, B3, E3 = 64, 16, 128
    pe3b = _make_pos_embedding(E3, 128)
    tok3 = jax.random.normal(k3, (S3, B3, E3), jnp.float32)
    out3 = positional_encoding_forward(tok3, pe3b, force_pallas=True,
                                       max_block_bytes=32 * 1024)    # grid (8, 2)
    out3 = jax.block_until_ready(out3)
    ref3 = tok3 + pe3b[:S3]
    assert jnp.allclose(out3, ref3, atol=1e-6), "batch-group split mismatch"

    # --- Test 4: fused training-mode dropout (structural check) -------------
    p = 0.1
    out4 = positional_encoding_forward(tok_big, pe_big, dropout_rate=p,
                                       train=True, rng_key=kd,
                                       force_pallas=True,
                                       max_block_bytes=128 * 1024)
    out4 = jax.block_until_ready(out4)
    scaled_ref = ref2 * jnp.float32(1.0 / (1.0 - p))
    ok = jnp.isclose(out4, 0.0, atol=1e-6) | \
         jnp.isclose(out4, scaled_ref, rtol=1e-5, atol=1e-5)
    assert bool(jnp.all(ok)), "dropout output not {0, x/(1-p)}"
    frac_dropped = float(jnp.mean((out4 == 0.0).astype(jnp.float32)))
    assert 0.05 < frac_dropped < 0.2, f"drop fraction {frac_dropped} off"

    print("KERNEL_OK")
</pallas_src>

<mosaic_0001>
module attributes {stable_mosaic.version = 11 : i64} {
  func.func @_fallback_eval_kernel(%arg0: i32, %arg1: memref<4x2x32xf32, #tpu.memory_space<vmem>>, %arg2: memref<4x1x32xf32, #tpu.memory_space<vmem>>, %arg3: memref<4x2x32xf32, #tpu.memory_space<vmem>>) attributes {dimension_semantics = [#tpu.dimension_semantics<parallel>], iteration_bounds = array<i64: 2>, scalar_prefetch = 0 : i64, scratch_operands = 0 : i64, tpu.core_type = #tpu.core_type<tc>, window_params = [{transform_indices = @transform_0, window_bounds = array<i64: 4, 2, 32>}, {transform_indices = @transform_1, window_bounds = array<i64: 4, 1, 32>}, {transform_indices = @transform_2, window_bounds = array<i64: 4, 2, 32>}]} {
    %c0 = arith.constant 0 : index
    %c0_0 = arith.constant 0 : index
    %c0_1 = arith.constant 0 : index
    %0 = vector.load %arg1[%c0, %c0_0, %c0_1] : memref<4x2x32xf32, #tpu.memory_space<vmem>>, vector<4x2x32xf32>
    %c0_2 = arith.constant 0 : index
    %c0_3 = arith.constant 0 : index
    %c0_4 = arith.constant 0 : index
    %1 = vector.load %arg2[%c0_2, %c0_3, %c0_4] : memref<4x1x32xf32, #tpu.memory_space<vmem>>, vector<4x1x32xf32>
    %2 = vector.broadcast %1 : vector<4x1x32xf32> to vector<4x2x32xf32>
    %3 = arith.addf %0, %2 : vector<4x2x32xf32>
    %c0_5 = arith.constant 0 : index
    %c0_6 = arith.constant 0 : index
    %c0_7 = arith.constant 0 : index
    %4 = vector.load %arg3[%c0_5, %c0_6, %c0_7] : memref<4x2x32xf32, #tpu.memory_space<vmem>>, vector<4x2x32xf32>
    tpu.vector_store %arg3[%c0_5, %c0_6, %c0_7], %3 {strides = array<i32>} : memref<4x2x32xf32, #tpu.memory_space<vmem>>, vector<4x2x32xf32>,
    return
  }
  func.func @transform_0(%arg0: i32) -> (i32, i32, i32) {
    %c0_i32 = arith.constant 0 : i32
    %c0_i32_0 = arith.constant 0 : i32
    %c0_i32_1 = arith.constant 0 : i32
    return %arg0, %c0_i32, %c0_i32_0 : i32, i32, i32
  }
  func.func @transform_1(%arg0: i32) -> (i32, i32, i32) {
    %c0_i32 = arith.constant 0 : i32
    %c0_i32_0 = arith.constant 0 : i32
    %c0_i32_1 = arith.constant 0 : i32
    return %arg0, %c0_i32, %c0_i32_0 : i32, i32, i32
  }
  func.func @transform_2(%arg0: i32) -> (i32, i32, i32) {
    %c0_i32 = arith.constant 0 : i32
    %c0_i32_0 = arith.constant 0 : i32
    %c0_i32_1 = arith.constant 0 : i32
    return %arg0, %c0_i32, %c0_i32_0 : i32, i32, i32
  }
}

</mosaic_0001>

<bundles_post_ra>
// kernel: tpu_custom_call.1
= control target key start
LH: loop header
LB: loop body
LE: loop exit
PB: predicated region body
PF: predicated region fallthrough
CT: control target
= control target key end

     0   :  { %7 = vsyncpa [#allocation3], 0  ;;  %s801_s0 = inlined_call_operand.hbm [shape: f32[8,2,32], index: 0, kind: input, shape index: {}]   ;;  %s802_s1 = inlined_call_operand.hbm [shape: f32[8,1,32], index: 1, kind: input, shape index: {}]   ;;  %s803_s2 = inlined_call_operand.hbm [shape: f32[8,2,32], index: 2, kind: output, shape index: {}]  }
   0x1   :  { %9 = vsyncpa [#allocation3 + $0x1], 0 }
   0x2   :  { %10 = vsyncpa [#allocation6], 0 }
   0x3   :  { %12 = vsyncpa [#allocation6 + $0x1], 0 }
   0x4   :  { %13 = vsyncpa [#allocation4], 0 }
   0x5   :  { %15 = vsyncpa [#allocation4 + $0x1], 0  ;;  %s588_s9 = smov 0   ;;  %s590_s10 = smov 0  }
   0x6   :  { %s592_s11 = smov 0   ;;  %s594_s12 = smov 0  }
   0x7 LB: > { %s609_s13 = sadd.s32 4294967295, %s562_s12   ;;  %s356_s14 = sadd.s32 4294967294, %s562_s12   ;;  %s562_s12 = sphi %s594_s12, %s819_s12   ;;  %s558_s11 = sphi %s592_s11, %s818_s11   ;;  %s554_s10 = sphi %s590_s10, %s817_s10   ;;  %s550_s9 = sphi %s588_s9, %s816_s9  }
   0x8   : > { %s613_s15 = sadd.s32 1, %s562_s12   ;;  %s28_s16 = sadd.s32 1, %s558_s11 }
   0x9   : > { %s25_s17 = ssub.s32 %s562_s12, %s613_s15  ;;  %p35_p0 = scmp.ne.s32.totalorder %s558_s11, %s554_s10 }
   0xa   : > { %p26_p1 = scmp.eq.s32.totalorder %s25_s17, 0  ;;  %p36_p2 = scmp.eq.s32.totalorder %s562_s12, 0 }
   0xb   : > { %p41_p3 = scmp.ne.s32.totalorder %s554_s10, %s550_s9  ;;  %p42_p4 = scmp.eq.s32.totalorder %s609_s13, 0 }
   0xc   : > { %s625_s18 = scalar_select %p26_p1, %s558_s11, %s28_s16  }
   0xd   : > { %p627_p5 = por %p36_p2, %p35_p0  ;;  %p631_p6 = por %p42_p4, %p41_p3 }
   0xe   : > { %p91_p7 = scmp.eq.s32.totalorder %s609_s13, 1  ;;  %p97_p8 = scmp.eq.s32.totalorder %s356_s14, 1 }
   0xf   : > { %s807_s20 = scalar_select %p631_p6, 1, 0 }
  0x10   : > { %p398_p10 = scmp.lt.s32.totalorder %s562_s12, 2  ;;  %p638_p11 = por %p91_p7, %p35_p0 }
  0x11   : > { %p642_p12 = por %p97_p8, %p41_p3  ;;  %s647_s23 = sand.u32 1, %s558_s11  }
  0x12   : > { %s808_s21 = scalar_select %p638_p11, 1, 0 }
  0x13   : > { %s809_s22 = scalar_select %p642_p12, 1, 0 }
  0x14   : > { %s378_s24 = sshll.u32 %s562_s12, 7  ;;  %s359_s25 = sshll.u32 %s647_s23, 3 }
  0x15   : > { %s654_s28 = scalar_lea.hbm %s801_s0, %s378_s24  ;;  %s121_s29 = scalar_lea.vmem [#allocation2], %s359_s25 }
  0x16   : > { %s128_s30 = sshll.u32 %s121_s29, 4  ;;  %p658_p13 = pnand %p398_p10, %p627_p5  ;;  %s662_s30 = int_to_ptr.vmem [resolvable:$true] %s128_s30 }
  0x17   : > { %s118_s4 = scalar_lea.sflag [#allocation3], %s647_s23  ;;  %s438_s5 = scalar_lea.hbm %s654_s28, 128 }
  0x18   : > { %p439_p0 = scmp.ne.s32.totalorder %s654_s28, %s438_s5  ;;  %p440_p1 = pneg %p658_p13 }
  0x19   : > { %s443_s8 = scalar_lea.hbm %s801_s0, 256  ;;  %p444_p4 = scmp.lt.s32.totalorder %s654_s28, %s801_s0 }
  0x1a   : > { %p441_p2 = pnand %p440_p1, %p439_p0  ;;  %p445_p5 = scmp.lt.s32.totalorder %s443_s8, %s438_s5 }
  0x1c   : > { %p442_p3 = pneg %p441_p2  ;;  %p446_p7 = por %p445_p5, %p444_p4 }
  0x1e   : > { %p447_p8 = pnand %p446_p7, %p442_p3 }
  0x20   : > { %450 = shalt.err (!%p447_p8)
}
  0x21   : > { %s451_s17 = scalar_lea.vmem %s662_s30, 128  ;;  %s564_s19 = smov [#allocation2]  }
  0x22   : > { %p452_p10 = scmp.ne.s32.totalorder %s662_s30, %s451_s17  ;;  %s456_s24 = sshll.u32 %s564_s19, 4  ;;  %s457_s24 = int_to_ptr.vmem [resolvable:$false] %s456_s24 }
  0x23   : > { %s458_s25 = scalar_lea.vmem %s457_s24, 256  ;;  %p459_p9 = scmp.lt.s32.totalorder %s662_s30, %s457_s24 }
  0x24   : > { %p454_p0 = pnand %p452_p10, %p440_p1  ;;  %p460_p12 = scmp.lt.s32.totalorder %s458_s25, %s451_s17 }
  0x26   : > { %p455_p2 = pneg %p454_p0  ;;  %p461_p11 = por %p460_p12, %p459_p9 }
  0x28   : > { %p462_p4 = pnand %p461_p11, %p455_p2 }
  0x2a   : > { %465 = shalt.err (!%p462_p4)
}
  0x2b   : > { %s565_s26 = smov 32   ;;  %s566_s27 = smov 2  }
  0x2c   : > { %390 = dma.hbm_to_vmem [thread:$0]  (!%p658_p13), %s654_s28, 128, %s662_s30, %s118_s4, %s565_s26, %s565_s26, %s566_s27  }
  0x2d   : > { %p365_p3 = scmp.ge.s32.totalorder %s562_s12, 1  ;;  %p157_p5 = scmp.lt.s32.totalorder %s562_s12, 3 }
  0x2e   : > { %s362_s29 = sshll.u32 %s647_s23, 2  ;;  %s379_s6 = sshll.u32 %s562_s12, 6 }
  0x2f   : > { %p694_p9 = pnand %p365_p3, %p157_p5  ;;  %s142_s7 = scalar_lea.vmem [#allocation5], %s362_s29 }
  0x30   : > { %s149_s8 = sshll.u32 %s142_s7, 4  ;;  %s702_s17 = scalar_lea.hbm %s802_s1, %s379_s6  ;;  %s704_s8 = int_to_ptr.vmem [resolvable:$true] %s149_s8 }
  0x31   : > { %s139_s28 = scalar_lea.sflag [#allocation6], %s647_s23  ;;  %s466_s30 = scalar_lea.hbm %s702_s17, 64 }
  0x32   : > { %p467_p11 = scmp.ne.s32.totalorder %s702_s17, %s466_s30  ;;  %s471_s24 = scalar_lea.hbm %s802_s1, 128 }
  0x33   : > { %p472_p8 = scmp.lt.s32.totalorder %s702_s17, %s802_s1  ;;  %p473_p10 = scmp.lt.s32.totalorder %s471_s24, %s466_s30 }
  0x34   : > { %p469_p12 = pnand %p467_p11, %p440_p1 }
  0x35   : > { %p474_p0 = por %p473_p10, %p472_p8 }
  0x36   : > { %p470_p7 = pneg %p469_p12 }
  0x38   : > { %p475_p2 = pnand %p474_p0, %p470_p7 }
  0x3a   : > { %478 = shalt.err (!%p475_p2)
}
  0x3b   : > { %s479_s27 = scalar_lea.vmem %s704_s8, 64  ;;  %s567_s29 = smov [#allocation5]  }
  0x3c   : > { %p480_p4 = scmp.ne.s32.totalorder %s704_s8, %s479_s27  ;;  %s484_s6 = sshll.u32 %s567_s29, 4  ;;  %s485_s6 = int_to_ptr.vmem [resolvable:$false] %s484_s6 }
  0x3d   : > { %s486_s7 = scalar_lea.vmem %s485_s6, 128  ;;  %p487_p11 = scmp.lt.s32.totalorder %s704_s8, %s485_s6 }
  0x3e   : > { %p482_p3 = pnand %p480_p4, %p440_p1  ;;  %p488_p12 = scmp.lt.s32.totalorder %s486_s7, %s479_s27 }
  0x40   : > { %p483_p5 = pneg %p482_p3  ;;  %p489_p6 = por %p488_p12, %p487_p11 }
  0x42   : > { %p490_p8 = pnand %p489_p6, %p483_p5 }
  0x44   : > { %493 = shalt.err (!%p490_p8)
}
  0x45   : > { %s568_s14 = smov 16   ;;  %s569_s16 = smov 1  }
  0x46   : > { %393 = dma.hbm_to_vmem [thread:$0]  (!%p658_p13), %s702_s17, 64, %s704_s8, %s139_s28, %s568_s14, %s568_s14, %s569_s16  }
  0x47   : > { %161 = sbr.rel (%p694_p9) target bundleno = 107 (0x6b), region = 28  ;;  %s734_s30 = sand.u32 (!%p694_p9), 1, %s554_s10  }
  0x48   : > { %s366_s4 = sshll.u32 (!%p694_p9), %s734_s30, 3  ;;  %s164_s19 = scalar_lea.sflag (!%p694_p9), [#allocation3], %s734_s30 }
  0x49   : > { %s167_s24 = scalar_lea.vmem (!%p694_p9), [#allocation2], %s366_s4  ;;  %p812_p6 = scmp.ne.s32.totalorder (!%p694_p9), %s807_s20, 0 }
  0x4c   : > { %537 = dma.done.wait (%p812_p6), %s164_s19, 128  }
  0x4d   : > { %539 = vsyncadd (%p812_p6), %s164_s19, 4294967168  ;;  %s367_s23 = sshll.u32 %s734_s30, 2  ;;  %s173_s3 = scalar_lea.sflag [#allocation6], %s734_s30 }
  0x4e   : > { %s176_s5 = scalar_lea.vmem [#allocation5], %s367_s23 }
  0x4f   : > { %541 = dma.done.wait (%p812_p6), %s173_s3, 64  }
  0x50   : > { %543 = vsyncadd (%p812_p6), %s173_s3, 4294967232  ;;  %vm241_vm0 = vcmask 254976   ;;  %s201_s8 = scalar_lea.vmem [#allocation7], %s366_s4  ;;  %s380_s28 = sshll.u32 %s609_s13, 7  ;;  %v205_v0 = vld [vmem:[%s167_s24] sm:$0x3] }
  0x51   : > { %s260_s17 = sshll.u32 %s201_s8, 4  ;;  %v369_v1 = vld [vmem:[%s176_s5] ss:$0 sm:$0xff]  ;;  %v206_v2 = vld [vmem:[%s167_s24 + $0x2] sm:$0x3]  ;;  %s754_s13 = scalar_lea.hbm %s803_s2, %s380_s28  ;;  %s749_s17 = int_to_ptr.vmem [resolvable:$true] %s260_s17 }
  0x52   : > { %v237_v3 = vadd.f32 %v369_v1, %v205_v0  ;;  %v370_v4 = vld [vmem:[%s176_s5 + $0x1] ss:$0 sm:$0xff]  ;;  %v207_v5 = vld [vmem:[%s167_s24 + $0x4] sm:$0x3]  ;;  %v371_v6 = vld [vmem:[%s176_s5 + $0x2] ss:$0 sm:$0xff] }
  0x53   : > { %v238_v7 = vadd.f32 %v370_v4, %v206_v2  ;;  %v239_v8 = vadd.f32 %v371_v6, %v207_v5  ;;  %v208_v9 = vld [vmem:[%s167_s24 + $0x6] sm:$0x3]  ;;  %v372_v10 = vld [vmem:[%s176_s5 + $0x3] ss:$0 sm:$0xff]  ;;  %s247_s26 = scalar_lea.sflag [#allocation4], %s734_s30  ;;  %s494_s27 = scalar_lea.vmem %s749_s17, 128 }
  0x54   : > { %242 = vst.msk [vmem:[%s201_s8] sm:$0x3] %vm241_vm0, %v237_v3  ;;  %v240_v11 = vadd.f32 %v372_v10, %v208_v9  ;;  %p495_p13 = scmp.ne.s32.totalorder %s749_s17, %s494_s27  ;;  %p813_p1 = scmp.ne.s32.totalorder %s808_s21, 0 }
  0x55   : > { %243 = vst.msk [vmem:[%s201_s8 + $0x2] sm:$0x3] %vm241_vm0, %v238_v7  ;;  %244 = vst.msk [vmem:[%s201_s8 + $0x4] sm:$0x3] %vm241_vm0, %v239_v8  ;;  %s570_s29 = smov [#allocation7]  }
  0x56   : > { %245 = vst.msk [vmem:[%s201_s8 + $0x6] sm:$0x3] %vm241_vm0, %v240_v11  ;;  %p496_p9 = pnand %p495_p13, %p813_p1  ;;  %s498_s6 = sshll.u32 %s570_s29, 4  ;;  %s499_s6 = int_to_ptr.vmem [resolvable:$false] %s498_s6 }
  0x57   : > { %s500_s7 = scalar_lea.vmem %s499_s6, 256  ;;  %p501_p10 = scmp.lt.s32.totalorder %s749_s17, %s499_s6 }
  0x58   : > { %p497_p7 = pneg %p496_p9  ;;  %p502_p0 = scmp.lt.s32.totalorder %s500_s7, %s494_s27 }
  0x5a   : > { %p503_p2 = por %p502_p0, %p501_p10 }
  0x5c   : > { %p504_p4 = pnand %p503_p2, %p497_p7 }
  0x5e   : > { %507 = shalt.err (!%p504_p4)
}
  0x5f   : > { %s508_s14 = scalar_lea.hbm %s754_s13, 128  ;;  %s512_s19 = scalar_lea.hbm %s803_s2, 256 }
  0x60   : > { %p509_p3 = scmp.ne.s32.totalorder %s754_s13, %s508_s14  ;;  %p513_p12 = scmp.lt.s32.totalorder %s754_s13, %s803_s2 }
  0x61   : > { %p514_p8 = scmp.lt.s32.totalorder %s512_s19, %s508_s14 }
  0x62   : > { %p510_p5 = pnand %p509_p3, %p813_p1 }
  0x63   : > { %p515_p6 = por %p514_p8, %p513_p12 }
  0x64   : > { %p511_p11 = pneg %p510_p5 }
  0x66   : > { %p516_p13 = pnand %p515_p6, %p511_p11 }
  0x68   : > { %519 = shalt.err (!%p516_p13)
}
  0x69   : > { %s571_s3 = smov 32   ;;  %s572_s5 = smov 2  }
  0x6a   : > { %385 = dma.vmem_to_hbm [thread:$0]  (%p813_p1), %s749_s17, 128, %s754_s13, %s247_s26, %s571_s3, %s571_s3, %s572_s5  }
  0x6b PF: > { %s275_s8 = sand.u32 1, %s550_s9   ;;  %p814_p9 = scmp.ne.s32.totalorder %s809_s22, 0 }
  0x6c   : > { %p815_p7 = scmp.ge.s32.totalorder %s562_s12, 2  ;;  %s276_s28 = scalar_lea.sflag [#allocation4], %s275_s8 }
  0x6e   : > { %p395_p10 = pnand %p815_p7, %p814_p9 }
  0x70   : > { %p396_p0 = pneg %p395_p10 }
  0x72   : > { %545 = dma.done.wait (%p396_p0), %s276_s28, 128  }
  0x73   : > { %547 = vsyncadd (%p396_p0), %s276_s28, 4294967168  ;;  %p18_p2 = scmp.ge.s32.totalorder %s613_s15, 4   ;;  %s816_s9 = smov %s554_s10 }
  0x74   : > { %s817_s10 = smov %s558_s11  ;;  %s818_s11 = smov %s625_s18 }
  0x75   : > { %s819_s12 = smov %s613_s15  ;;  %20 = sbr.rel (!%p18_p2) target bundleno = 7 (0x7), region = 86 }
  0x7a   :  { %281 = vsyncpa [#allocation3], 1 }
  0x7b   :  { %283 = vsyncpa [#allocation3 + $0x1], 1 }
  0x7c   :  { %284 = vsyncpa [#allocation6], 1 }
  0x7d   :  { %286 = vsyncpa [#allocation6 + $0x1], 1 }
  0x7e   :  { %287 = vsyncpa [#allocation4], 1 }
  0x7f   :  { %289 = vsyncpa [#allocation4 + $0x1], 1 }

</bundles_post_ra>
